<compile_context>
chip_gen: v6e
topology: v6e:2x2x1
jax: 0.10.0
libtpu: 0.0.40
codegen_flags: <defaults>
</compile_context>

<pallas_src>
import jax
import jax.numpy as jnp
from jax.experimental import pallas as pl
from jax.experimental.pallas import tpu as pltpu

IN_DIM = 1024
HID_DIM = 256
OUT_DIM = 512
BN_EPS = 1e-5
LEAKY_SLOPE = 0.1


def _round_up(x, m):
    return ((x + m - 1) // m) * m


def _cdiv(a, b):
    return -(-a // b)


def _pick_block_m(n, max_block):
    # Largest 8-aligned tile <= max_block that splits the batch as evenly as
    # possible (minimizes wasted compute on the ragged last tile).
    n8 = _round_up(max(n, 8), 8)
    if n8 <= max_block:
        return n8
    num_chunks = _cdiv(n, max_block)
    return _round_up(_cdiv(n, num_chunks), 8)


def _vmem_limit_bytes():
    # Per-generation budget with headroom for double-buffered pipeline buffers:
    # ~48 MiB on v7x (64 MiB physical), ~96 MiB on v5e/v6e (128 MiB physical).
    try:
        cap = int(pltpu.get_tpu_info().vmem_capacity_bytes)
    except Exception:
        cap = 64 << 20
    return max(16 << 20, min((cap * 3) // 4, 96 << 20))


# ---------------------------------------------------------------------------
# Phase 1: fc1 + per-tile partial batch statistics (fully parallel grid).
# ---------------------------------------------------------------------------
def _make_fc1_stats_kernel(n_rows, block_m, needs_mask):
    def kernel(x_ref, w1_ref, h_ref, psum_ref, psumsq_ref):
        h = jnp.dot(x_ref[...], w1_ref[...], preferred_element_type=jnp.float32)
        h_ref[...] = h

        if needs_mask:
            # Ragged last tile: rows beyond the real batch hold unspecified
            # values; zero them out of the statistics only (the h writeback is
            # already clipped to the array by Pallas).
            local = jax.lax.broadcasted_iota(jnp.int32, (block_m, 1), 0)
            valid = (pl.program_id(0) * block_m + local) < n_rows
            hs = jnp.where(valid, h, 0.0)
        else:
            hs = h

        # Per-tile partial sums as (8, HID) via pure VPU cross-vreg adds
        # (sublane dim kept intact; no MXU, no XLU). Final 8-row + cross-tile
        # reduction happens in the tiny XLA glue between the two calls.
        hg = hs.reshape(block_m // 8, 8, HID_DIM)
        psum_ref[...] = jnp.sum(hg, axis=0)
        psumsq_ref[...] = jnp.sum(hg * hg, axis=0)

    return kernel


# ---------------------------------------------------------------------------
# Phase 2: normalize (pre-fused scale/shift), LeakyReLU, fc2.
# ---------------------------------------------------------------------------
def bn_act_fc2_kernel(h_ref, scale_ref, shift_ref, w2_ref, b2_ref, o_ref):
    hn = h_ref[...] * scale_ref[...] + shift_ref[...]
    a = jnp.maximum(hn, LEAKY_SLOPE * hn)  # LeakyReLU(0.1), single VPU max
    o_ref[...] = (jnp.dot(a, w2_ref[...], preferred_element_type=jnp.float32)
                  + b2_ref[...]).astype(o_ref.dtype)


def lof_block_forward(x, w1, b1, gamma, beta, w2, b2, *, max_block_rows=2048):
    n = x.shape[0]
    # b1 is intentionally unused: a per-channel bias added before training-mode
    # BatchNorm is exactly cancelled by the mean subtraction (zero effect on
    # the forward output).
    del b1

    block_m = _pick_block_m(n, max_block_rows)
    num_tiles = _cdiv(n, block_m)
    needs_mask = (n % block_m) != 0 or n < block_m
    vmem_limit = _vmem_limit_bytes()

    # ---- Phase 1: h = x @ W1 + per-tile partial column sum / sumsq ----
    fc1_kernel = _make_fc1_stats_kernel(n, block_m, needs_mask)
    h, psum, psumsq = pl.pallas_call(
        fc1_kernel,
        out_shape=(
            jax.ShapeDtypeStruct((n, HID_DIM), jnp.float32),
            jax.ShapeDtypeStruct((num_tiles * 8, HID_DIM), jnp.float32),
            jax.ShapeDtypeStruct((num_tiles * 8, HID_DIM), jnp.float32),
        ),
        grid=(num_tiles,),
        in_specs=[
            pl.BlockSpec((block_m, IN_DIM), lambda i: (i, 0)),
            pl.BlockSpec((IN_DIM, HID_DIM), lambda i: (0, 0)),  # resident weight
        ],
        out_specs=(
            pl.BlockSpec((block_m, HID_DIM), lambda i: (i, 0)),
            pl.BlockSpec((8, HID_DIM), lambda i: (i, 0)),  # per-tile partial
            pl.BlockSpec((8, HID_DIM), lambda i: (i, 0)),  # per-tile partial
        ),
        compiler_params=pltpu.CompilerParams(
            # Every tile writes disjoint output blocks -> fully parallel
            # (shards across both TensorCores on v7x; harmless elsewhere).
            dimension_semantics=("parallel",),
            vmem_limit_bytes=vmem_limit,
        ),
        cost_estimate=pl.CostEstimate(
            flops=2 * num_tiles * block_m * IN_DIM * HID_DIM
                  + 4 * num_tiles * block_m * HID_DIM,
            transcendentals=0,
            bytes_accessed=4 * (n * IN_DIM + IN_DIM * HID_DIM
                                + n * HID_DIM + 2 * num_tiles * 8 * HID_DIM),
        ),
    )(x, w1)

    # ---- Tiny vector math between the two calls (plain XLA) ----
    inv_n = 1.0 / float(n)
    col_sum = jnp.sum(psum, axis=0, keepdims=True)        # (1, 256)
    col_sumsq = jnp.sum(psumsq, axis=0, keepdims=True)     # (1, 256)
    mean = col_sum * inv_n
    var = jnp.maximum(col_sumsq * inv_n - mean * mean, 0.0)  # biased (training) var
    inv_std = jax.lax.rsqrt(var + BN_EPS)
    scale = gamma * inv_std            # fused gamma * inv_std
    shift = beta - mean * scale        # fused -mean*scale + beta

    # ---- Phase 2: normalize + LeakyReLU + fc2, tiles independent ----
    out = pl.pallas_call(
        bn_act_fc2_kernel,
        out_shape=jax.ShapeDtypeStruct((n, OUT_DIM), jnp.float32),
        grid=(num_tiles,),
        in_specs=[
            pl.BlockSpec((block_m, HID_DIM), lambda i: (i, 0)),
            pl.BlockSpec((1, HID_DIM), lambda i: (0, 0)),
            pl.BlockSpec((1, HID_DIM), lambda i: (0, 0)),
            pl.BlockSpec((HID_DIM, OUT_DIM), lambda i: (0, 0)),  # resident weight
            pl.BlockSpec((1, OUT_DIM), lambda i: (0, 0)),
        ],
        out_specs=pl.BlockSpec((block_m, OUT_DIM), lambda i: (i, 0)),
        compiler_params=pltpu.CompilerParams(
            dimension_semantics=("parallel",),
            vmem_limit_bytes=vmem_limit,
        ),
        cost_estimate=pl.CostEstimate(
            flops=2 * num_tiles * block_m * HID_DIM * OUT_DIM
                  + 4 * num_tiles * block_m * HID_DIM
                  + num_tiles * block_m * OUT_DIM,
            transcendentals=0,
            bytes_accessed=4 * (n * HID_DIM + HID_DIM * OUT_DIM
                                + n * OUT_DIM + 2 * HID_DIM + OUT_DIM),
        ),
    )(h, scale, shift, w2, b2)

    return out


def init_params(key):
    k1, k2 = jax.random.split(key, 2)
    # weights_init_classifier: Linear weights ~ N(0, std=0.001), biases = 0.
    w1 = 0.001 * jax.random.normal(k1, (IN_DIM, HID_DIM), dtype=jnp.float32)
    b1 = jnp.zeros((1, HID_DIM), dtype=jnp.float32)
    # BatchNorm1d defaults: gamma = 1, beta = 0.
    gamma = jnp.ones((1, HID_DIM), dtype=jnp.float32)
    beta = jnp.zeros((1, HID_DIM), dtype=jnp.float32)
    w2 = 0.001 * jax.random.normal(k2, (HID_DIM, OUT_DIM), dtype=jnp.float32)
    b2 = jnp.zeros((1, OUT_DIM), dtype=jnp.float32)
    return w1, b1, gamma, beta, w2, b2


def reference_forward(x, w1, b1, gamma, beta, w2, b2):
    h = x @ w1 + b1
    mean = jnp.mean(h, axis=0, keepdims=True)
    var = jnp.mean((h - mean) ** 2, axis=0, keepdims=True)
    hn = (h - mean) / jnp.sqrt(var + BN_EPS) * gamma + beta
    a = jnp.where(hn >= 0, hn, LEAKY_SLOPE * hn)
    return a @ w2 + b2


if __name__ == "__main__":
    key = jax.random.PRNGKey(0)
    kx, kp = jax.random.split(key)
    params = init_params(kp)

    # Case 1: small batch, single exact tile.
    batch = 8
    x = jax.random.normal(kx, (batch, IN_DIM), dtype=jnp.float32)
    out = jax.block_until_ready(lof_block_forward(x, *params))
    ref = reference_forward(x, *params)
    assert out.shape == (batch, OUT_DIM)
    assert jnp.allclose(out, ref, atol=1e-4, rtol=1e-4)

    # Case 2: multi-tile with a ragged last tile (exercises the masked-stats /
    # per-tile-partial path) via a small max_block_rows override.
    batch2 = 200
    x2 = jax.random.normal(jax.random.fold_in(kx, 1), (batch2, IN_DIM),
                           dtype=jnp.float32)
    out2 = jax.block_until_ready(
        lof_block_forward(x2, *params, max_block_rows=64))
    ref2 = reference_forward(x2, *params)
    assert out2.shape == (batch2, OUT_DIM)
    assert jnp.allclose(out2, ref2, atol=1e-4, rtol=1e-4)

    print("KERNEL_OK")
</pallas_src>

<mosaic_0001>
module attributes {stable_mosaic.version = 11 : i64} {
  func.func @kernel(%arg0: i32, %arg1: memref<8x1024xf32, #tpu.memory_space<vmem>>, %arg2: memref<1024x256xf32, #tpu.memory_space<vmem>>, %arg3: memref<8x256xf32, #tpu.memory_space<vmem>>, %arg4: memref<8x256xf32, #tpu.memory_space<vmem>>, %arg5: memref<8x256xf32, #tpu.memory_space<vmem>>) attributes {dimension_semantics = [#tpu.dimension_semantics<parallel>], iteration_bounds = array<i64: 1>, scalar_prefetch = 0 : i64, scratch_operands = 0 : i64, tpu.core_type = #tpu.core_type<tc>, window_params = [{transform_indices = @transform_0, window_bounds = array<i64: 8, 1024>}, {pipeline_mode = #tpu.pipeline_mode<synchronous>, transform_indices = @transform_1, window_bounds = array<i64: 1024, 256>}, {transform_indices = @transform_2, window_bounds = array<i64: 8, 256>}, {transform_indices = @transform_3, window_bounds = array<i64: 8, 256>}, {transform_indices = @transform_4, window_bounds = array<i64: 8, 256>}]} {
    %c0 = arith.constant 0 : index
    %c0_0 = arith.constant 0 : index
    %0 = vector.load %arg1[%c0, %c0_0] : memref<8x1024xf32, #tpu.memory_space<vmem>>, vector<8x1024xf32>
    %c0_1 = arith.constant 0 : index
    %c0_2 = arith.constant 0 : index
    %1 = vector.load %arg2[%c0_1, %c0_2] : memref<1024x256xf32, #tpu.memory_space<vmem>>, vector<1024x256xf32>
    %cst = arith.constant dense<0.000000e+00> : vector<8x256xf32>
    %2 = tpu.matmul %0, %1, %cst {dimension_numbers = #tpu.dot_dimension_numbers<[1], [0], [0], [1], [0, 0, 1, 1], [], []>} : vector<8x1024xf32>, vector<1024x256xf32>, vector<8x256xf32> -> vector<8x256xf32>
    %c0_3 = arith.constant 0 : index
    %c0_4 = arith.constant 0 : index
    %3 = vector.load %arg3[%c0_3, %c0_4] : memref<8x256xf32, #tpu.memory_space<vmem>>, vector<8x256xf32>
    tpu.vector_store %arg3[%c0_3, %c0_4], %2 {strides = array<i32>} : memref<8x256xf32, #tpu.memory_space<vmem>>, vector<8x256xf32>,
    %4 = vector.shape_cast %2 : vector<8x256xf32> to vector<1x8x256xf32>
    %cst_5 = arith.constant dense<0.000000e+00> : vector<8x256xf32>
    %5 = vector.multi_reduction <add>, %4, %cst_5 [0] : vector<1x8x256xf32> to vector<8x256xf32>
    %c0_6 = arith.constant 0 : index
    %c0_7 = arith.constant 0 : index
    %6 = vector.load %arg4[%c0_6, %c0_7] : memref<8x256xf32, #tpu.memory_space<vmem>>, vector<8x256xf32>
    tpu.vector_store %arg4[%c0_6, %c0_7], %5 {strides = array<i32>} : memref<8x256xf32, #tpu.memory_space<vmem>>, vector<8x256xf32>,
    %7 = arith.mulf %4, %4 : vector<1x8x256xf32>
    %cst_8 = arith.constant dense<0.000000e+00> : vector<8x256xf32>
    %8 = vector.multi_reduction <add>, %7, %cst_8 [0] : vector<1x8x256xf32> to vector<8x256xf32>
    %c0_9 = arith.constant 0 : index
    %c0_10 = arith.constant 0 : index
    %9 = vector.load %arg5[%c0_9, %c0_10] : memref<8x256xf32, #tpu.memory_space<vmem>>, vector<8x256xf32>
    tpu.vector_store %arg5[%c0_9, %c0_10], %8 {strides = array<i32>} : memref<8x256xf32, #tpu.memory_space<vmem>>, vector<8x256xf32>,
    return
  }
  func.func @transform_0(%arg0: i32) -> (i32, i32) {
    %c0_i32 = arith.constant 0 : i32
    %c0_i32_0 = arith.constant 0 : i32
    return %arg0, %c0_i32 : i32, i32
  }
  func.func @transform_1(%arg0: i32) -> (i32, i32) {
    %c0_i32 = arith.constant 0 : i32
    %c0_i32_0 = arith.constant 0 : i32
    %c0_i32_1 = arith.constant 0 : i32
    return %c0_i32, %c0_i32_0 : i32, i32
  }
  func.func @transform_2(%arg0: i32) -> (i32, i32) {
    %c0_i32 = arith.constant 0 : i32
    %c0_i32_0 = arith.constant 0 : i32
    return %arg0, %c0_i32 : i32, i32
  }
  func.func @transform_3(%arg0: i32) -> (i32, i32) {
    %c0_i32 = arith.constant 0 : i32
    %c0_i32_0 = arith.constant 0 : i32
    return %arg0, %c0_i32 : i32, i32
  }
  func.func @transform_4(%arg0: i32) -> (i32, i32) {
    %c0_i32 = arith.constant 0 : i32
    %c0_i32_0 = arith.constant 0 : i32
    return %arg0, %c0_i32 : i32, i32
  }
}

</mosaic_0001>

<bundles_post_ra>
// kernel: tpu_custom_call.1
= control target key start
LH: loop header
LB: loop body
LE: loop exit
PB: predicated region body
PF: predicated region fallthrough
CT: control target
= control target key end

     0   :  { %10 = vsyncpa [#allocation3], 0  ;;  %s807_s0 = inlined_call_operand.hbm [shape: f32[8,1024], index: 0, kind: input, shape index: {}]   ;;  %s808_s1 = inlined_call_operand.hbm [shape: f32[1024,256], index: 1, kind: input, shape index: {}]   ;;  %s809_s2 = inlined_call_operand.hbm [shape: f32[8,256], index: 2, kind: output, shape index: {0}]   ;;  %s810_s3 = inlined_call_operand.hbm [shape: f32[8,256], index: 3, kind: output, shape index: {1}]   ;;  %s811_s4 = inlined_call_operand.hbm [shape: f32[8,256], index: 4, kind: output, shape index: {2}]  }
   0x1   :  { %11 = vsyncpa [#allocation6], 0 }
   0x2   :  { %12 = vsyncpa [#allocation4], 0 }
   0x3   :  { %13 = vsyncpa [#allocation9], 0  ;;  %s760_s15 = smov [#allocation2]   ;;  %s761_s17 = smov [#allocation5]  }
   0x4   :  { %s20_s16 = sshll.u32 %s760_s15, 4  ;;  %s29_s18 = sshll.u32 %s761_s17, 4  ;;  %s21_s16 = int_to_ptr.vmem [resolvable:$true] %s20_s16  ;;  %s30_s18 = int_to_ptr.vmem [resolvable:$true] %s29_s18 }
   0x5   :  { %s660_s19 = scalar_lea.vmem %s21_s16, 1024  ;;  %p665_p1 = scmp.lt.s32.totalorder %s21_s16, %s21_s16 }
   0x6   :  { %p661_p0 = scmp.ne.s32.totalorder %s21_s16, %s660_s19  ;;  %p666_p2 = scmp.lt.s32.totalorder %s660_s19, %s660_s19 }
   0x8   :  { %p667_p3 = por %p666_p2, %p665_p1 }
   0xa   :  { %p668_p4 = pnand %p667_p3, %p661_p0 }
   0xc   :  { %671 = shalt.err (!%p668_p4)
}
   0xd   :  { %23 = dma.hbm_to_vmem [thread:$0]  %s807_s0, 1024, %s21_s16, [#allocation3]  }
   0xe   :  { %s680_s22 = scalar_lea.vmem %s30_s18, 32768  ;;  %p685_p6 = scmp.lt.s32.totalorder %s30_s18, %s30_s18 }
   0xf   :  { %p681_p5 = scmp.ne.s32.totalorder %s30_s18, %s680_s22  ;;  %p686_p7 = scmp.lt.s32.totalorder %s680_s22, %s680_s22 }
  0x11   :  { %p687_p8 = por %p686_p7, %p685_p6 }
  0x13   :  { %p688_p9 = pnand %p687_p8, %p681_p5 }
  0x15   :  { %691 = shalt.err (!%p688_p9)
}
  0x16   :  { %s762_s23 = smov 256   ;;  %s763_s24 = smov 16  }
  0x17   :  { %35 = dma.hbm_to_vmem [thread:$0]  %s808_s1, 32768, %s30_s18, [#allocation6], %s762_s23, %s762_s23, %s763_s24  }
  0x18   :  { %752 = dma.done.wait [#allocation3], 1024  }
  0x19   :  { %753 = vsyncadd [#allocation3], 4294966272 }
  0x1a   :  { %754 = dma.done.wait [#allocation6], 32768  }
  0x1b   :  { %755 = vsyncadd [#allocation6], 4294934528  ;;  %v81_v0 = vld [vmem:[#allocation5 + $0xf8] sm:$0xff]  ;;  %v80_v2 = vld [vmem:[#allocation5 + $0xf0] sm:$0xff]  ;;  %s764_s0 = smov [#allocation8]   ;;  %s765_s27 = smov [#allocation7]  }
  0x1c   :  { %v145_v1 = vld [vmem:[#allocation5 + $0x2f8] sm:$0xff]  ;;  %306 = vmatprep.subr.mxu0 %v81_v0  ;;  %v144_v3 = vld [vmem:[#allocation5 + $0x2f0] sm:$0xff]  ;;  %v79_v4 = vld [vmem:[#allocation5 + $0xe8] sm:$0xff]  ;;  %s618_s1 = sshll.u32 %s764_s0, 4  ;;  %s608_s28 = sshll.u32 %s765_s27, 4  ;;  %s619_s1 = int_to_ptr.vmem [resolvable:$true] %s618_s1  ;;  %s609_s28 = int_to_ptr.vmem [resolvable:$true] %s608_s28 }
  0x1d   :  { %377 = vmatprep.subr.mxu1 %v145_v1  ;;  %v143_v5 = vld [vmem:[#allocation5 + $0x2e8] sm:$0xff]  ;;  %307 = vmatpush1.msra.mxu0 %v80_v2  ;;  %v78_v6 = vld [vmem:[#allocation5 + $0xe0] sm:$0xff]  ;;  %v77_v8 = vld [vmem:[#allocation5 + $0xd8] sm:$0xff]  ;;  %s766_s29 = smov [#allocation10]   ;;  %s692_s5 = scalar_lea.vmem %s619_s1, 256 }
  0x1e   :  { %378 = vmatpush1.msra.mxu1 %v144_v3  ;;  %v142_v7 = vld [vmem:[#allocation5 + $0x2e0] sm:$0xff]  ;;  %308 = vmatprep.subr.mxu0 %v79_v4  ;;  %v141_v9 = vld [vmem:[#allocation5 + $0x2d8] sm:$0xff]  ;;  %v76_v10 = vld [vmem:[#allocation5 + $0xd0] sm:$0xff]  ;;  %s628_s30 = sshll.u32 %s766_s29, 4  ;;  %p693_p10 = scmp.ne.s32.totalorder %s619_s1, %s692_s5  ;;  %s629_s30 = int_to_ptr.vmem [resolvable:$true] %s628_s30 }
  0x1f   :  { %379 = vmatprep.subr.mxu1 %v143_v5  ;;  %v140_v11 = vld [vmem:[#allocation5 + $0x2d0] sm:$0xff]  ;;  %309 = vmatpush1.msra.mxu0 %v78_v6  ;;  %v75_v12 = vld [vmem:[#allocation5 + $0xc8] sm:$0xff]  ;;  %v74_v14 = vld [vmem:[#allocation5 + $0xc0] sm:$0xff]  ;;  %p697_p11 = scmp.lt.s32.totalorder %s619_s1, %s619_s1  ;;  %p698_p12 = scmp.lt.s32.totalorder %s692_s5, %s692_s5 }
  0x20   :  { %380 = vmatpush1.msra.mxu1 %v142_v7  ;;  %v139_v13 = vld [vmem:[#allocation5 + $0x2c8] sm:$0xff]  ;;  %310 = vmatprep.subr.mxu0 %v77_v8  ;;  %v138_v15 = vld [vmem:[#allocation5 + $0x2c0] sm:$0xff]  ;;  %v73_v16 = vld [vmem:[#allocation5 + $0xb8] sm:$0xff] }
  0x21   :  { %381 = vmatprep.subr.mxu1 %v141_v9  ;;  %311 = vmatpush1.msra.mxu0 %v76_v10  ;;  %v137_v17 = vld [vmem:[#allocation5 + $0x2b8] sm:$0xff]  ;;  %v72_v18 = vld [vmem:[#allocation5 + $0xb0] sm:$0xff]  ;;  %v71_v20 = vld [vmem:[#allocation5 + $0xa8] sm:$0xff]  ;;  %p699_p13 = por %p698_p12, %p697_p11 }
  0x22   :  { %382 = vmatpush1.msra.mxu1 %v140_v11  ;;  %312 = vmatprep.subr.mxu0 %v75_v12  ;;  %v136_v19 = vld [vmem:[#allocation5 + $0x2b0] sm:$0xff]  ;;  %v135_v21 = vld [vmem:[#allocation5 + $0x2a8] sm:$0xff]  ;;  %v70_v22 = vld [vmem:[#allocation5 + $0xa0] sm:$0xff] }
  0x23   :  { %383 = vmatprep.subr.mxu1 %v139_v13  ;;  %313 = vmatpush1.msra.mxu0 %v74_v14  ;;  %v134_v23 = vld [vmem:[#allocation5 + $0x2a0] sm:$0xff]  ;;  %v69_v24 = vld [vmem:[#allocation5 + $0x98] sm:$0xff]  ;;  %v68_v26 = vld [vmem:[#allocation5 + $0x90] sm:$0xff]  ;;  %p700_p0 = pnand %p699_p13, %p693_p10 }
  0x24   :  { %384 = vmatpush1.msra.mxu1 %v138_v15  ;;  %314 = vmatprep.subr.mxu0 %v73_v16  ;;  %v133_v25 = vld [vmem:[#allocation5 + $0x298] sm:$0xff]  ;;  %v132_v27 = vld [vmem:[#allocation5 + $0x290] sm:$0xff]  ;;  %v67_v28 = vld [vmem:[#allocation5 + $0x88] sm:$0xff] }
  0x25   :  { %385 = vmatprep.subr.mxu1 %v137_v17  ;;  %315 = vmatpush1.msra.mxu0 %v72_v18  ;;  %v131_v29 = vld [vmem:[#allocation5 + $0x288] sm:$0xff]  ;;  %v66_v30 = vld [vmem:[#allocation5 + $0x80] sm:$0xff]  ;;  %v65_v32 = vld [vmem:[#allocation5 + $0x78] sm:$0xff] }
  0x26   :  { %386 = vmatpush1.msra.mxu1 %v136_v19  ;;  %316 = vmatprep.subr.mxu0 %v71_v20  ;;  %v130_v31 = vld [vmem:[#allocation5 + $0x280] sm:$0xff]  ;;  %v129_v33 = vld [vmem:[#allocation5 + $0x278] sm:$0xff]  ;;  %v64_v34 = vld [vmem:[#allocation5 + $0x70] sm:$0xff] }
  0x27   :  { %387 = vmatprep.subr.mxu1 %v135_v21  ;;  %317 = vmatpush1.msra.mxu0 %v70_v22  ;;  %v128_v35 = vld [vmem:[#allocation5 + $0x270] sm:$0xff]  ;;  %v63_v36 = vld [vmem:[#allocation5 + $0x68] sm:$0xff]  ;;  %v62_v38 = vld [vmem:[#allocation5 + $0x60] sm:$0xff] }
  0x28   :  { %388 = vmatpush1.msra.mxu1 %v134_v23  ;;  %318 = vmatprep.subr.mxu0 %v69_v24  ;;  %v127_v37 = vld [vmem:[#allocation5 + $0x268] sm:$0xff]  ;;  %v126_v39 = vld [vmem:[#allocation5 + $0x260] sm:$0xff]  ;;  %v61_v40 = vld [vmem:[#allocation5 + $0x58] sm:$0xff] }
  0x29   :  { %389 = vmatprep.subr.mxu1 %v133_v25  ;;  %319 = vmatpush1.msra.mxu0 %v68_v26  ;;  %v125_v41 = vld [vmem:[#allocation5 + $0x258] sm:$0xff]  ;;  %v60_v42 = vld [vmem:[#allocation5 + $0x50] sm:$0xff]  ;;  %v59_v44 = vld [vmem:[#allocation5 + $0x48] sm:$0xff] }
  0x2a   :  { %390 = vmatpush1.msra.mxu1 %v132_v27  ;;  %320 = vmatprep.subr.mxu0 %v67_v28  ;;  %v124_v43 = vld [vmem:[#allocation5 + $0x250] sm:$0xff]  ;;  %v123_v45 = vld [vmem:[#allocation5 + $0x248] sm:$0xff]  ;;  %v58_v46 = vld [vmem:[#allocation5 + $0x40] sm:$0xff] }
  0x2b   :  { %391 = vmatprep.subr.mxu1 %v131_v29  ;;  %321 = vmatpush1.msra.mxu0 %v66_v30  ;;  %v122_v47 = vld [vmem:[#allocation5 + $0x240] sm:$0xff]  ;;  %v57_v48 = vld [vmem:[#allocation5 + $0x38] sm:$0xff]  ;;  %v56_v50 = vld [vmem:[#allocation5 + $0x30] sm:$0xff] }
  0x2c   :  { %392 = vmatpush1.msra.mxu1 %v130_v31  ;;  %322 = vmatprep.subr.mxu0 %v65_v32  ;;  %v121_v49 = vld [vmem:[#allocation5 + $0x238] sm:$0xff]  ;;  %v120_v51 = vld [vmem:[#allocation5 + $0x230] sm:$0xff]  ;;  %v55_v52 = vld [vmem:[#allocation5 + $0x28] sm:$0xff] }
  0x2d   :  { %393 = vmatprep.subr.mxu1 %v129_v33  ;;  %323 = vmatpush1.msra.mxu0 %v64_v34  ;;  %v119_v53 = vld [vmem:[#allocation5 + $0x228] sm:$0xff]  ;;  %v54_v54 = vld [vmem:[#allocation5 + $0x20] sm:$0xff]  ;;  %v53_v56 = vld [vmem:[#allocation5 + $0x18] sm:$0xff] }
  0x2e   :  { %394 = vmatpush1.msra.mxu1 %v128_v35  ;;  %324 = vmatprep.subr.mxu0 %v63_v36  ;;  %v118_v55 = vld [vmem:[#allocation5 + $0x220] sm:$0xff]  ;;  %v117_v57 = vld [vmem:[#allocation5 + $0x218] sm:$0xff]  ;;  %v52_v58 = vld [vmem:[#allocation5 + $0x10] sm:$0xff] }
  0x2f   :  { %395 = vmatprep.subr.mxu1 %v127_v37  ;;  %325 = vmatpush1.msra.mxu0 %v62_v38  ;;  %v116_v59 = vld [vmem:[#allocation5 + $0x210] sm:$0xff]  ;;  %v51_v60 = vld [vmem:[#allocation5 + $0x8] sm:$0xff]  ;;  %v50_v62 = vld [vmem:[#allocation5] sm:$0xff] }
  0x30   :  { %396 = vmatpush1.msra.mxu1 %v126_v39  ;;  %326 = vmatprep.subr.mxu0 %v61_v40  ;;  %v115_v61 = vld [vmem:[#allocation5 + $0x208] sm:$0xff]  ;;  %v114_v63 = vld [vmem:[#allocation5 + $0x200] sm:$0xff]  ;;  %v113_v0 = vld [vmem:[#allocation5 + $0x1f8] sm:$0xff] }
  0x31   :  { %397 = vmatprep.subr.mxu1 %v125_v41  ;;  %327 = vmatpush1.msra.mxu0 %v60_v42  ;;  %v177_v1 = vld [vmem:[#allocation5 + $0x3f8] sm:$0xff]  ;;  %v112_v2 = vld [vmem:[#allocation5 + $0x1f0] sm:$0xff]  ;;  %v111_v4 = vld [vmem:[#allocation5 + $0x1e8] sm:$0xff] }
  0x32   :  { %398 = vmatpush1.msra.mxu1 %v124_v43  ;;  %328 = vmatprep.subr.mxu0 %v59_v44  ;;  %v176_v3 = vld [vmem:[#allocation5 + $0x3f0] sm:$0xff]  ;;  %v175_v5 = vld [vmem:[#allocation5 + $0x3e8] sm:$0xff]  ;;  %v110_v6 = vld [vmem:[#allocation5 + $0x1e0] sm:$0xff] }
  0x33   :  { %399 = vmatprep.subr.mxu1 %v123_v45  ;;  %329 = vmatpush1.msra.mxu0 %v58_v46  ;;  %v174_v7 = vld [vmem:[#allocation5 + $0x3e0] sm:$0xff]  ;;  %v109_v8 = vld [vmem:[#allocation5 + $0x1d8] sm:$0xff]  ;;  %v108_v10 = vld [vmem:[#allocation5 + $0x1d0] sm:$0xff] }
  0x34   :  { %400 = vmatpush1.msra.mxu1 %v122_v47  ;;  %330 = vmatprep.subr.mxu0 %v57_v48  ;;  %v173_v9 = vld [vmem:[#allocation5 + $0x3d8] sm:$0xff]  ;;  %v172_v11 = vld [vmem:[#allocation5 + $0x3d0] sm:$0xff]  ;;  %v107_v12 = vld [vmem:[#allocation5 + $0x1c8] sm:$0xff] }
  0x35   :  { %401 = vmatprep.subr.mxu1 %v121_v49  ;;  %331 = vmatpush1.msra.mxu0 %v56_v50  ;;  %v171_v13 = vld [vmem:[#allocation5 + $0x3c8] sm:$0xff]  ;;  %v106_v14 = vld [vmem:[#allocation5 + $0x1c0] sm:$0xff]  ;;  %v105_v16 = vld [vmem:[#allocation5 + $0x1b8] sm:$0xff] }
  0x36   :  { %402 = vmatpush1.msra.mxu1 %v120_v51  ;;  %332 = vmatprep.subr.mxu0 %v55_v52  ;;  %v170_v15 = vld [vmem:[#allocation5 + $0x3c0] sm:$0xff]  ;;  %v169_v17 = vld [vmem:[#allocation5 + $0x3b8] sm:$0xff]  ;;  %v104_v18 = vld [vmem:[#allocation5 + $0x1b0] sm:$0xff] }
  0x37   :  { %403 = vmatprep.subr.mxu1 %v119_v53  ;;  %333 = vmatpush1.msra.mxu0 %v54_v54  ;;  %v168_v19 = vld [vmem:[#allocation5 + $0x3b0] sm:$0xff]  ;;  %v103_v20 = vld [vmem:[#allocation5 + $0x1a8] sm:$0xff]  ;;  %v102_v22 = vld [vmem:[#allocation5 + $0x1a0] sm:$0xff] }
  0x38   :  { %404 = vmatpush1.msra.mxu1 %v118_v55  ;;  %334 = vmatprep.subr.mxu0 %v53_v56  ;;  %v167_v21 = vld [vmem:[#allocation5 + $0x3a8] sm:$0xff]  ;;  %v166_v23 = vld [vmem:[#allocation5 + $0x3a0] sm:$0xff]  ;;  %v101_v24 = vld [vmem:[#allocation5 + $0x198] sm:$0xff] }
  0x39   :  { %405 = vmatprep.subr.mxu1 %v117_v57  ;;  %335 = vmatpush1.msra.mxu0 %v52_v58  ;;  %v165_v25 = vld [vmem:[#allocation5 + $0x398] sm:$0xff]  ;;  %v100_v26 = vld [vmem:[#allocation5 + $0x190] sm:$0xff]  ;;  %v99_v28 = vld [vmem:[#allocation5 + $0x188] sm:$0xff] }
  0x3a   :  { %406 = vmatpush1.msra.mxu1 %v116_v59  ;;  %336 = vmatprep.subr.mxu0 %v51_v60  ;;  %v164_v27 = vld [vmem:[#allocation5 + $0x390] sm:$0xff]  ;;  %v163_v29 = vld [vmem:[#allocation5 + $0x388] sm:$0xff]  ;;  %v98_v30 = vld [vmem:[#allocation5 + $0x180] sm:$0xff] }
  0x3b   :  { %407 = vmatprep.subr.mxu1 %v115_v61  ;;  %337 = vmatpush1.msra.mxu0 %v50_v62  ;;  %v162_v31 = vld [vmem:[#allocation5 + $0x380] sm:$0xff]  ;;  %v97_v32 = vld [vmem:[#allocation5 + $0x178] sm:$0xff]  ;;  %v96_v34 = vld [vmem:[#allocation5 + $0x170] sm:$0xff] }
  0x3c   :  { %408 = vmatpush1.msra.mxu1 %v114_v63  ;;  %338 = vmatprep.subr.mxu0 %v113_v0  ;;  %v161_v33 = vld [vmem:[#allocation5 + $0x378] sm:$0xff]  ;;  %v160_v35 = vld [vmem:[#allocation5 + $0x370] sm:$0xff]  ;;  %v95_v36 = vld [vmem:[#allocation5 + $0x168] sm:$0xff] }
  0x3d   :  { %409 = vmatprep.subr.mxu1 %v177_v1  ;;  %339 = vmatpush2.msra.mxu0 %v112_v2  ;;  %v159_v37 = vld [vmem:[#allocation5 + $0x368] sm:$0xff]  ;;  %v94_v38 = vld [vmem:[#allocation5 + $0x160] sm:$0xff]  ;;  %v93_v40 = vld [vmem:[#allocation5 + $0x158] sm:$0xff] }
  0x3e   :  { %410 = vmatpush2.msra.mxu1 %v176_v3  ;;  %340 = vmatprep.subr.mxu0 %v111_v4  ;;  %v158_v39 = vld [vmem:[#allocation5 + $0x360] sm:$0xff]  ;;  %v157_v41 = vld [vmem:[#allocation5 + $0x358] sm:$0xff]  ;;  %v92_v42 = vld [vmem:[#allocation5 + $0x150] sm:$0xff] }
  0x3f   :  { %411 = vmatprep.subr.mxu1 %v175_v5  ;;  %341 = vmatpush2.msra.mxu0 %v110_v6  ;;  %v156_v43 = vld [vmem:[#allocation5 + $0x350] sm:$0xff]  ;;  %v91_v44 = vld [vmem:[#allocation5 + $0x148] sm:$0xff]  ;;  %v90_v46 = vld [vmem:[#allocation5 + $0x140] sm:$0xff] }
  0x40   :  { %412 = vmatpush2.msra.mxu1 %v174_v7  ;;  %342 = vmatprep.subr.mxu0 %v109_v8  ;;  %v155_v45 = vld [vmem:[#allocation5 + $0x348] sm:$0xff]  ;;  %v154_v47 = vld [vmem:[#allocation5 + $0x340] sm:$0xff]  ;;  %v89_v48 = vld [vmem:[#allocation5 + $0x138] sm:$0xff] }
  0x41   :  { %413 = vmatprep.subr.mxu1 %v173_v9  ;;  %343 = vmatpush2.msra.mxu0 %v108_v10  ;;  %v153_v49 = vld [vmem:[#allocation5 + $0x338] sm:$0xff]  ;;  %v88_v50 = vld [vmem:[#allocation5 + $0x130] sm:$0xff]  ;;  %v87_v52 = vld [vmem:[#allocation5 + $0x128] sm:$0xff] }
  0x42   :  { %414 = vmatpush2.msra.mxu1 %v172_v11  ;;  %344 = vmatprep.subr.mxu0 %v107_v12  ;;  %v152_v51 = vld [vmem:[#allocation5 + $0x330] sm:$0xff]  ;;  %v151_v53 = vld [vmem:[#allocation5 + $0x328] sm:$0xff]  ;;  %v86_v54 = vld [vmem:[#allocation5 + $0x120] sm:$0xff] }
  0x43   :  { %415 = vmatprep.subr.mxu1 %v171_v13  ;;  %345 = vmatpush2.msra.mxu0 %v106_v14  ;;  %v150_v55 = vld [vmem:[#allocation5 + $0x320] sm:$0xff]  ;;  %v85_v56 = vld [vmem:[#allocation5 + $0x118] sm:$0xff]  ;;  %v84_v58 = vld [vmem:[#allocation5 + $0x110] sm:$0xff] }
  0x44   :  { %416 = vmatpush2.msra.mxu1 %v170_v15  ;;  %346 = vmatprep.subr.mxu0 %v105_v16  ;;  %v149_v57 = vld [vmem:[#allocation5 + $0x318] sm:$0xff]  ;;  %v148_v59 = vld [vmem:[#allocation5 + $0x310] sm:$0xff]  ;;  %v83_v60 = vld [vmem:[#allocation5 + $0x108] sm:$0xff] }
  0x45   :  { %417 = vmatprep.subr.mxu1 %v169_v17  ;;  %347 = vmatpush2.msra.mxu0 %v104_v18  ;;  %v147_v61 = vld [vmem:[#allocation5 + $0x308] sm:$0xff]  ;;  %v82_v62 = vld [vmem:[#allocation5 + $0x100] sm:$0xff]  ;;  %v45_v1 = vld [vmem:[#allocation2 + $0x18] sm:$0xff] }
  0x46   :  { %418 = vmatpush2.msra.mxu1 %v168_v19  ;;  %348 = vmatprep.subr.mxu0 %v103_v20  ;;  %v43_v63 = vld [vmem:[#allocation2 + $0x8] sm:$0xff]  ;;  %v146_v0 = vld [vmem:[#allocation5 + $0x300] sm:$0xff]  ;;  %v44_v3 = vld [vmem:[#allocation2 + $0x10] sm:$0xff] }
  0x47   :  { %419 = vmatprep.subr.mxu1 %v167_v21  ;;  %349 = vmatpush2.msra.mxu0 %v102_v22  ;;  %v42_v2 = vld [vmem:[#allocation2] sm:$0xff]  ;;  %v209_v4 = vld [vmem:[#allocation5 + $0x4f8] sm:$0xff]  ;;  %v208_v6 = vld [vmem:[#allocation5 + $0x4f0] sm:$0xff] }
  0x48   :  { %420 = vmatpush2.msra.mxu1 %v166_v23  ;;  %350 = vmatprep.subr.mxu0 %v101_v24  ;;  %v273_v5 = vld [vmem:[#allocation5 + $0x6f8] sm:$0xff]  ;;  %v272_v7 = vld [vmem:[#allocation5 + $0x6f0] sm:$0xff]  ;;  %v207_v8 = vld [vmem:[#allocation5 + $0x4e8] sm:$0xff] }
  0x49   :  { %421 = vmatprep.subr.mxu1 %v165_v25  ;;  %351 = vmatpush2.msra.mxu0 %v100_v26  ;;  %v271_v9 = vld [vmem:[#allocation5 + $0x6e8] sm:$0xff]  ;;  %v206_v10 = vld [vmem:[#allocation5 + $0x4e0] sm:$0xff]  ;;  %v205_v12 = vld [vmem:[#allocation5 + $0x4d8] sm:$0xff] }
  0x4a   :  { %422 = vmatpush2.msra.mxu1 %v164_v27  ;;  %352 = vmatprep.subr.mxu0 %v99_v28  ;;  %v270_v11 = vld [vmem:[#allocation5 + $0x6e0] sm:$0xff]  ;;  %v269_v13 = vld [vmem:[#allocation5 + $0x6d8] sm:$0xff]  ;;  %v204_v14 = vld [vmem:[#allocation5 + $0x4d0] sm:$0xff] }
  0x4b   :  { %423 = vmatprep.subr.mxu1 %v163_v29  ;;  %353 = vmatpush2.msra.mxu0 %v98_v30  ;;  %v268_v15 = vld [vmem:[#allocation5 + $0x6d0] sm:$0xff]  ;;  %v203_v16 = vld [vmem:[#allocation5 + $0x4c8] sm:$0xff]  ;;  %v202_v18 = vld [vmem:[#allocation5 + $0x4c0] sm:$0xff] }
  0x4c   :  { %424 = vmatpush2.msra.mxu1 %v162_v31  ;;  %354 = vmatprep.subr.mxu0 %v97_v32  ;;  %v267_v17 = vld [vmem:[#allocation5 + $0x6c8] sm:$0xff]  ;;  %v266_v19 = vld [vmem:[#allocation5 + $0x6c0] sm:$0xff]  ;;  %v201_v20 = vld [vmem:[#allocation5 + $0x4b8] sm:$0xff] }
  0x4d   :  { %425 = vmatprep.subr.mxu1 %v161_v33  ;;  %355 = vmatpush2.msra.mxu0 %v96_v34  ;;  %v265_v21 = vld [vmem:[#allocation5 + $0x6b8] sm:$0xff]  ;;  %v200_v22 = vld [vmem:[#allocation5 + $0x4b0] sm:$0xff]  ;;  %v199_v24 = vld [vmem:[#allocation5 + $0x4a8] sm:$0xff] }
  0x4e   :  { %426 = vmatpush2.msra.mxu1 %v160_v35  ;;  %356 = vmatprep.subr.mxu0 %v95_v36  ;;  %v264_v23 = vld [vmem:[#allocation5 + $0x6b0] sm:$0xff]  ;;  %v263_v25 = vld [vmem:[#allocation5 + $0x6a8] sm:$0xff]  ;;  %v198_v26 = vld [vmem:[#allocation5 + $0x4a0] sm:$0xff] }
  0x4f   :  { %427 = vmatprep.subr.mxu1 %v159_v37  ;;  %357 = vmatpush2.msra.mxu0 %v94_v38  ;;  %v262_v27 = vld [vmem:[#allocation5 + $0x6a0] sm:$0xff]  ;;  %v197_v28 = vld [vmem:[#allocation5 + $0x498] sm:$0xff]  ;;  %v196_v30 = vld [vmem:[#allocation5 + $0x490] sm:$0xff] }
  0x50   :  { %428 = vmatpush2.msra.mxu1 %v158_v39  ;;  %358 = vmatprep.subr.mxu0 %v93_v40  ;;  %v261_v29 = vld [vmem:[#allocation5 + $0x698] sm:$0xff]  ;;  %v260_v31 = vld [vmem:[#allocation5 + $0x690] sm:$0xff]  ;;  %v195_v32 = vld [vmem:[#allocation5 + $0x488] sm:$0xff] }
  0x51   :  { %429 = vmatprep.subr.mxu1 %v157_v41  ;;  %359 = vmatpush2.msra.mxu0 %v92_v42  ;;  %v259_v33 = vld [vmem:[#allocation5 + $0x688] sm:$0xff]  ;;  %v194_v34 = vld [vmem:[#allocation5 + $0x480] sm:$0xff]  ;;  %v193_v36 = vld [vmem:[#allocation5 + $0x478] sm:$0xff] }
  0x52   :  { %430 = vmatpush2.msra.mxu1 %v156_v43  ;;  %360 = vmatprep.subr.mxu0 %v91_v44  ;;  %v258_v35 = vld [vmem:[#allocation5 + $0x680] sm:$0xff]  ;;  %v257_v37 = vld [vmem:[#allocation5 + $0x678] sm:$0xff]  ;;  %v192_v38 = vld [vmem:[#allocation5 + $0x470] sm:$0xff] }
  0x53   :  { %431 = vmatprep.subr.mxu1 %v155_v45  ;;  %361 = vmatpush2.msra.mxu0 %v90_v46  ;;  %v256_v39 = vld [vmem:[#allocation5 + $0x670] sm:$0xff]  ;;  %v191_v40 = vld [vmem:[#allocation5 + $0x468] sm:$0xff]  ;;  %v190_v42 = vld [vmem:[#allocation5 + $0x460] sm:$0xff] }
  0x54   :  { %432 = vmatpush2.msra.mxu1 %v154_v47  ;;  %362 = vmatprep.subr.mxu0 %v89_v48  ;;  %v255_v41 = vld [vmem:[#allocation5 + $0x668] sm:$0xff]  ;;  %v254_v43 = vld [vmem:[#allocation5 + $0x660] sm:$0xff]  ;;  %v189_v44 = vld [vmem:[#allocation5 + $0x458] sm:$0xff] }
  0x55   :  { %433 = vmatprep.subr.mxu1 %v153_v49  ;;  %363 = vmatpush2.msra.mxu0 %v88_v50  ;;  %v253_v45 = vld [vmem:[#allocation5 + $0x658] sm:$0xff]  ;;  %v188_v46 = vld [vmem:[#allocation5 + $0x450] sm:$0xff]  ;;  %v187_v48 = vld [vmem:[#allocation5 + $0x448] sm:$0xff] }
  0x56   :  { %434 = vmatpush2.msra.mxu1 %v152_v51  ;;  %364 = vmatprep.subr.mxu0 %v87_v52  ;;  %v252_v47 = vld [vmem:[#allocation5 + $0x650] sm:$0xff]  ;;  %v251_v49 = vld [vmem:[#allocation5 + $0x648] sm:$0xff]  ;;  %v186_v50 = vld [vmem:[#allocation5 + $0x440] sm:$0xff] }
  0x57   :  { %435 = vmatprep.subr.mxu1 %v151_v53  ;;  %365 = vmatpush2.msra.mxu0 %v86_v54  ;;  %v250_v51 = vld [vmem:[#allocation5 + $0x640] sm:$0xff]  ;;  %v185_v52 = vld [vmem:[#allocation5 + $0x438] sm:$0xff]  ;;  %v184_v54 = vld [vmem:[#allocation5 + $0x430] sm:$0xff] }
  0x58   :  { %436 = vmatpush2.msra.mxu1 %v150_v55  ;;  %366 = vmatprep.subr.mxu0 %v85_v56  ;;  %v249_v53 = vld [vmem:[#allocation5 + $0x638] sm:$0xff]  ;;  %v248_v55 = vld [vmem:[#allocation5 + $0x630] sm:$0xff]  ;;  %v183_v56 = vld [vmem:[#allocation5 + $0x428] sm:$0xff] }
  0x59   :  { %437 = vmatprep.subr.mxu1 %v149_v57  ;;  %367 = vmatpush2.msra.mxu0 %v84_v58  ;;  %v247_v57 = vld [vmem:[#allocation5 + $0x628] sm:$0xff]  ;;  %v182_v58 = vld [vmem:[#allocation5 + $0x420] sm:$0xff] }
  0x5a   :  { %438 = vmatpush2.msra.mxu1 %v148_v59  ;;  %368 = vmatprep.subr.mxu0 %v83_v60  ;;  %v246_v59 = vld [vmem:[#allocation5 + $0x620] sm:$0xff]  ;;  %v181_v60 = vld [vmem:[#allocation5 + $0x418] sm:$0xff] }
  0x5b   :  { %439 = vmatprep.subr.mxu1 %v147_v61  ;;  %369 = vmatpush2.msra.mxu0 %v82_v62  ;;  %v245_v61 = vld [vmem:[#allocation5 + $0x618] sm:$0xff]  ;;  %v180_v62 = vld [vmem:[#allocation5 + $0x410] sm:$0xff] }
  0x5c   :  { %370 = vmatprep.mubr.f32.mxu0 %v43_v63  ;;  %440 = vmatpush2.msra.mxu1 %v146_v0  ;;  %v244_v63 = vld [vmem:[#allocation5 + $0x610] sm:$0xff]  ;;  %v179_v0 = vld [vmem:[#allocation5 + $0x408] sm:$0xff] }
  0x5d   :  { %441 = vmatprep.mubr.f32.mxu1 %v45_v1  ;;  %371 = vmatmul.mubr.f32.vlgmr.msra.gmra.mxu0 %v42_v2  ;;  %v243_v1 = vld [vmem:[#allocation5 + $0x608] sm:$0xff]  ;;  %v178_v2 = vld [vmem:[#allocation5 + $0x400] sm:$0xff] }
  0x5e   :  { %442 = vmatmul.mubr.f32.vlgmr.msra.gmra.mxu1 %v44_v3  ;;  %448 = vmatprep.subr.mxu0 %v209_v4  ;;  %v242_v3 = vld [vmem:[#allocation5 + $0x600] sm:$0xff]  ;;  %v241_v4 = vld [vmem:[#allocation5 + $0x5f8] sm:$0xff] }
  0x5f   :  { %519 = vmatprep.subr.mxu1 %v273_v5  ;;  %449 = vmatpush1.msra.mxu0 %v208_v6  ;;  %v305_v5 = vld [vmem:[#allocation5 + $0x7f8] sm:$0xff]  ;;  %v240_v6 = vld [vmem:[#allocation5 + $0x5f0] sm:$0xff] }
  0x60   :  { %520 = vmatpush1.msra.mxu1 %v272_v7  ;;  %450 = vmatprep.subr.mxu0 %v207_v8  ;;  %v304_v7 = vld [vmem:[#allocation5 + $0x7f0] sm:$0xff]  ;;  %v239_v8 = vld [vmem:[#allocation5 + $0x5e8] sm:$0xff] }
  0x61   :  { %521 = vmatprep.subr.mxu1 %v271_v9  ;;  %451 = vmatpush1.msra.mxu0 %v206_v10  ;;  %v303_v9 = vld [vmem:[#allocation5 + $0x7e8] sm:$0xff]  ;;  %v238_v10 = vld [vmem:[#allocation5 + $0x5e0] sm:$0xff] }
  0x62   :  { %522 = vmatpush1.msra.mxu1 %v270_v11  ;;  %452 = vmatprep.subr.mxu0 %v205_v12  ;;  %v302_v11 = vld [vmem:[#allocation5 + $0x7e0] sm:$0xff]  ;;  %v237_v12 = vld [vmem:[#allocation5 + $0x5d8] sm:$0xff] }
  0x63   :  { %523 = vmatprep.subr.mxu1 %v269_v13  ;;  %453 = vmatpush1.msra.mxu0 %v204_v14  ;;  %v301_v13 = vld [vmem:[#allocation5 + $0x7d8] sm:$0xff]  ;;  %v236_v14 = vld [vmem:[#allocation5 + $0x5d0] sm:$0xff] }
  0x64   :  { %524 = vmatpush1.msra.mxu1 %v268_v15  ;;  %454 = vmatprep.subr.mxu0 %v203_v16  ;;  %v300_v15 = vld [vmem:[#allocation5 + $0x7d0] sm:$0xff]  ;;  %v235_v16 = vld [vmem:[#allocation5 + $0x5c8] sm:$0xff] }
  0x65   :  { %525 = vmatprep.subr.mxu1 %v267_v17  ;;  %455 = vmatpush1.msra.mxu0 %v202_v18  ;;  %v299_v17 = vld [vmem:[#allocation5 + $0x7c8] sm:$0xff]  ;;  %v234_v18 = vld [vmem:[#allocation5 + $0x5c0] sm:$0xff] }
  0x66   :  { %526 = vmatpush1.msra.mxu1 %v266_v19  ;;  %456 = vmatprep.subr.mxu0 %v201_v20  ;;  %v298_v19 = vld [vmem:[#allocation5 + $0x7c0] sm:$0xff]  ;;  %v233_v20 = vld [vmem:[#allocation5 + $0x5b8] sm:$0xff] }
  0x67   :  { %527 = vmatprep.subr.mxu1 %v265_v21  ;;  %457 = vmatpush1.msra.mxu0 %v200_v22  ;;  %v297_v21 = vld [vmem:[#allocation5 + $0x7b8] sm:$0xff]  ;;  %v232_v22 = vld [vmem:[#allocation5 + $0x5b0] sm:$0xff] }
  0x68   :  { %528 = vmatpush1.msra.mxu1 %v264_v23  ;;  %458 = vmatprep.subr.mxu0 %v199_v24  ;;  %v296_v23 = vld [vmem:[#allocation5 + $0x7b0] sm:$0xff]  ;;  %v231_v24 = vld [vmem:[#allocation5 + $0x5a8] sm:$0xff] }
  0x69   :  { %529 = vmatprep.subr.mxu1 %v263_v25  ;;  %459 = vmatpush1.msra.mxu0 %v198_v26  ;;  %v295_v25 = vld [vmem:[#allocation5 + $0x7a8] sm:$0xff]  ;;  %v230_v26 = vld [vmem:[#allocation5 + $0x5a0] sm:$0xff] }
  0x6a   :  { %530 = vmatpush1.msra.mxu1 %v262_v27  ;;  %460 = vmatprep.subr.mxu0 %v197_v28  ;;  %v294_v27 = vld [vmem:[#allocation5 + $0x7a0] sm:$0xff]  ;;  %v229_v28 = vld [vmem:[#allocation5 + $0x598] sm:$0xff] }
  0x6b   :  { %531 = vmatprep.subr.mxu1 %v261_v29  ;;  %461 = vmatpush1.msra.mxu0 %v196_v30  ;;  %v293_v29 = vld [vmem:[#allocation5 + $0x798] sm:$0xff]  ;;  %v228_v30 = vld [vmem:[#allocation5 + $0x590] sm:$0xff] }
  0x6c   :  { %532 = vmatpush1.msra.mxu1 %v260_v31  ;;  %462 = vmatprep.subr.mxu0 %v195_v32  ;;  %v292_v31 = vld [vmem:[#allocation5 + $0x790] sm:$0xff]  ;;  %v227_v32 = vld [vmem:[#allocation5 + $0x588] sm:$0xff] }
  0x6d   :  { %533 = vmatprep.subr.mxu1 %v259_v33  ;;  %463 = vmatpush1.msra.mxu0 %v194_v34  ;;  %v291_v33 = vld [vmem:[#allocation5 + $0x788] sm:$0xff]  ;;  %v226_v34 = vld [vmem:[#allocation5 + $0x580] sm:$0xff] }
  0x6e   :  { %534 = vmatpush1.msra.mxu1 %v258_v35  ;;  %464 = vmatprep.subr.mxu0 %v193_v36  ;;  %v290_v35 = vld [vmem:[#allocation5 + $0x780] sm:$0xff]  ;;  %v225_v36 = vld [vmem:[#allocation5 + $0x578] sm:$0xff] }
  0x6f   :  { %535 = vmatprep.subr.mxu1 %v257_v37  ;;  %465 = vmatpush1.msra.mxu0 %v192_v38  ;;  %v289_v37 = vld [vmem:[#allocation5 + $0x778] sm:$0xff]  ;;  %v224_v38 = vld [vmem:[#allocation5 + $0x570] sm:$0xff] }
  0x70   :  { %536 = vmatpush1.msra.mxu1 %v256_v39  ;;  %466 = vmatprep.subr.mxu0 %v191_v40  ;;  %v288_v39 = vld [vmem:[#allocation5 + $0x770] sm:$0xff]  ;;  %v223_v40 = vld [vmem:[#allocation5 + $0x568] sm:$0xff] }
  0x71   :  { %537 = vmatprep.subr.mxu1 %v255_v41  ;;  %467 = vmatpush1.msra.mxu0 %v190_v42  ;;  %v287_v41 = vld [vmem:[#allocation5 + $0x768] sm:$0xff]  ;;  %v222_v42 = vld [vmem:[#allocation5 + $0x560] sm:$0xff] }
  0x72   :  { %538 = vmatpush1.msra.mxu1 %v254_v43  ;;  %468 = vmatprep.subr.mxu0 %v189_v44  ;;  %v286_v43 = vld [vmem:[#allocation5 + $0x760] sm:$0xff]  ;;  %v221_v44 = vld [vmem:[#allocation5 + $0x558] sm:$0xff] }
  0x73   :  { %539 = vmatprep.subr.mxu1 %v253_v45  ;;  %469 = vmatpush1.msra.mxu0 %v188_v46  ;;  %v285_v45 = vld [vmem:[#allocation5 + $0x758] sm:$0xff]  ;;  %v220_v46 = vld [vmem:[#allocation5 + $0x550] sm:$0xff] }
  0x74   :  { %540 = vmatpush1.msra.mxu1 %v252_v47  ;;  %470 = vmatprep.subr.mxu0 %v187_v48  ;;  %v284_v47 = vld [vmem:[#allocation5 + $0x750] sm:$0xff]  ;;  %v219_v48 = vld [vmem:[#allocation5 + $0x548] sm:$0xff] }
  0x75   :  { %541 = vmatprep.subr.mxu1 %v251_v49  ;;  %471 = vmatpush1.msra.mxu0 %v186_v50  ;;  %v283_v49 = vld [vmem:[#allocation5 + $0x748] sm:$0xff]  ;;  %v218_v50 = vld [vmem:[#allocation5 + $0x540] sm:$0xff] }
  0x76   :  { %542 = vmatpush1.msra.mxu1 %v250_v51  ;;  %472 = vmatprep.subr.mxu0 %v185_v52  ;;  %v282_v51 = vld [vmem:[#allocation5 + $0x740] sm:$0xff]  ;;  %v217_v52 = vld [vmem:[#allocation5 + $0x538] sm:$0xff] }
  0x77   :  { %543 = vmatprep.subr.mxu1 %v249_v53  ;;  %473 = vmatpush1.msra.mxu0 %v184_v54  ;;  %v281_v53 = vld [vmem:[#allocation5 + $0x738] sm:$0xff]  ;;  %v216_v54 = vld [vmem:[#allocation5 + $0x530] sm:$0xff] }
  0x78   :  { %544 = vmatpush1.msra.mxu1 %v248_v55  ;;  %474 = vmatprep.subr.mxu0 %v183_v56  ;;  %v280_v55 = vld [vmem:[#allocation5 + $0x730] sm:$0xff]  ;;  %v215_v56 = vld [vmem:[#allocation5 + $0x528] sm:$0xff] }
  0x79   :  { %545 = vmatprep.subr.mxu1 %v247_v57  ;;  %475 = vmatpush1.msra.mxu0 %v182_v58  ;;  %v279_v57 = vld [vmem:[#allocation5 + $0x728] sm:$0xff]  ;;  %v214_v58 = vld [vmem:[#allocation5 + $0x520] sm:$0xff] }
  0x7a   :  { %546 = vmatpush1.msra.mxu1 %v246_v59  ;;  %476 = vmatprep.subr.mxu0 %v181_v60  ;;  %v278_v59 = vld [vmem:[#allocation5 + $0x720] sm:$0xff]  ;;  %v213_v60 = vld [vmem:[#allocation5 + $0x518] sm:$0xff] }
  0x7b   :  { %547 = vmatprep.subr.mxu1 %v245_v61  ;;  %477 = vmatpush1.msra.mxu0 %v180_v62  ;;  %v277_v61 = vld [vmem:[#allocation5 + $0x718] sm:$0xff]  ;;  %v212_v62 = vld [vmem:[#allocation5 + $0x510] sm:$0xff] }
  0x7c   :  { %548 = vmatpush1.msra.mxu1 %v244_v63  ;;  %478 = vmatprep.subr.mxu0 %v179_v0  ;;  %v276_v63 = vld [vmem:[#allocation5 + $0x710] sm:$0xff]  ;;  %v211_v0 = vld [vmem:[#allocation5 + $0x508] sm:$0xff] }
  0x7d   :  { %549 = vmatprep.subr.mxu1 %v243_v1  ;;  %479 = vmatpush1.msra.mxu0 %v178_v2  ;;  %v275_v1 = vld [vmem:[#allocation5 + $0x708] sm:$0xff]  ;;  %v210_v2 = vld [vmem:[#allocation5 + $0x500] sm:$0xff] }
  0x7e   :  { %550 = vmatpush1.msra.mxu1 %v242_v3  ;;  %480 = vmatprep.subr.mxu0 %v241_v4  ;;  %v47_v3 = vld [vmem:[#allocation2 + $0x28] sm:$0xff]  ;;  %v274_v4 = vld [vmem:[#allocation5 + $0x700] sm:$0xff] }
  0x7f   :  { %551 = vmatprep.subr.mxu1 %v305_v5  ;;  %481 = vmatpush2.msra.mxu0 %v240_v6  ;;  %v49_v5 = vld [vmem:[#allocation2 + $0x38] sm:$0xff]  ;;  %v46_v6 = vld [vmem:[#allocation2 + $0x20] sm:$0xff] }
  0x80   :  { %552 = vmatpush2.msra.mxu1 %v304_v7  ;;  %482 = vmatprep.subr.mxu0 %v239_v8  ;;  %v48_v7 = vld [vmem:[#allocation2 + $0x30] sm:$0xff] }
  0x81   :  { %553 = vmatprep.subr.mxu1 %v303_v9  ;;  %483 = vmatpush2.msra.mxu0 %v238_v10 }
  0x82   :  { %554 = vmatpush2.msra.mxu1 %v302_v11  ;;  %484 = vmatprep.subr.mxu0 %v237_v12 }
  0x83   :  { %555 = vmatprep.subr.mxu1 %v301_v13  ;;  %485 = vmatpush2.msra.mxu0 %v236_v14 }
  0x84   :  { %556 = vmatpush2.msra.mxu1 %v300_v15  ;;  %486 = vmatprep.subr.mxu0 %v235_v16 }
  0x85   :  { %557 = vmatprep.subr.mxu1 %v299_v17  ;;  %487 = vmatpush2.msra.mxu0 %v234_v18 }
  0x86   :  { %558 = vmatpush2.msra.mxu1 %v298_v19  ;;  %488 = vmatprep.subr.mxu0 %v233_v20 }
  0x87   :  { %559 = vmatprep.subr.mxu1 %v297_v21  ;;  %489 = vmatpush2.msra.mxu0 %v232_v22 }
  0x88   :  { %560 = vmatpush2.msra.mxu1 %v296_v23  ;;  %490 = vmatprep.subr.mxu0 %v231_v24 }
  0x89   :  { %561 = vmatprep.subr.mxu1 %v295_v25  ;;  %491 = vmatpush2.msra.mxu0 %v230_v26 }
  0x8a   :  { %562 = vmatpush2.msra.mxu1 %v294_v27  ;;  %492 = vmatprep.subr.mxu0 %v229_v28 }
  0x8b   :  { %563 = vmatprep.subr.mxu1 %v293_v29  ;;  %493 = vmatpush2.msra.mxu0 %v228_v30 }
  0x8c   :  { %564 = vmatpush2.msra.mxu1 %v292_v31  ;;  %494 = vmatprep.subr.mxu0 %v227_v32 }
  0x8d   :  { %565 = vmatprep.subr.mxu1 %v291_v33  ;;  %495 = vmatpush2.msra.mxu0 %v226_v34 }
  0x8e   :  { %566 = vmatpush2.msra.mxu1 %v290_v35  ;;  %496 = vmatprep.subr.mxu0 %v225_v36 }
  0x8f   :  { %567 = vmatprep.subr.mxu1 %v289_v37  ;;  %497 = vmatpush2.msra.mxu0 %v224_v38 }
  0x90   :  { %568 = vmatpush2.msra.mxu1 %v288_v39  ;;  %498 = vmatprep.subr.mxu0 %v223_v40 }
  0x91   :  { %569 = vmatprep.subr.mxu1 %v287_v41  ;;  %499 = vmatpush2.msra.mxu0 %v222_v42 }
  0x92   :  { %570 = vmatpush2.msra.mxu1 %v286_v43  ;;  %500 = vmatprep.subr.mxu0 %v221_v44 }
  0x93   :  { %571 = vmatprep.subr.mxu1 %v285_v45  ;;  %501 = vmatpush2.msra.mxu0 %v220_v46 }
  0x94   :  { %572 = vmatpush2.msra.mxu1 %v284_v47  ;;  %502 = vmatprep.subr.mxu0 %v219_v48 }
  0x95   :  { %573 = vmatprep.subr.mxu1 %v283_v49  ;;  %503 = vmatpush2.msra.mxu0 %v218_v50 }
  0x96   :  { %574 = vmatpush2.msra.mxu1 %v282_v51  ;;  %504 = vmatprep.subr.mxu0 %v217_v52 }
  0x97   :  { %575 = vmatprep.subr.mxu1 %v281_v53  ;;  %505 = vmatpush2.msra.mxu0 %v216_v54 }
  0x98   :  { %576 = vmatpush2.msra.mxu1 %v280_v55  ;;  %506 = vmatprep.subr.mxu0 %v215_v56 }
  0x99   :  { %577 = vmatprep.subr.mxu1 %v279_v57  ;;  %507 = vmatpush2.msra.mxu0 %v214_v58 }
  0x9a   :  { %578 = vmatpush2.msra.mxu1 %v278_v59  ;;  %508 = vmatprep.subr.mxu0 %v213_v60 }
  0x9b   :  { %579 = vmatprep.subr.mxu1 %v277_v61  ;;  %509 = vmatpush2.msra.mxu0 %v212_v62 }
  0x9c   :  { %580 = vmatpush2.msra.mxu1 %v276_v63  ;;  %510 = vmatprep.subr.mxu0 %v211_v0 }
  0x9d   :  { %581 = vmatprep.subr.mxu1 %v275_v1  ;;  %511 = vmatpush2.msra.mxu0 %v210_v2 }
  0x9e   :  { %512 = vmatprep.mubr.f32.mxu0 %v47_v3  ;;  %582 = vmatpush2.msra.mxu1 %v274_v4 }
  0x9f   :  { %583 = vmatprep.mubr.f32.mxu1 %v49_v5  ;;  %513 = vmatmul.mubr.f32.vlgmr.msra.gmra.mxu0 %v46_v6 }
  0xa0   :  { %584 = vmatmul.mubr.f32.vlgmr.msra.gmra.mxu1 %v48_v7 }
 0x11d   :  { %v372_v8 = vpop.f32.mrf.mxu0 }
 0x11e   :  { %v443_v9 = vpop.f32.mrf.mxu1 }
 0x11f   :  { %v374_v10 = vpop.f32.mrf.mxu0  ;;  %v444_v12 = vadd.f32 %v443_v9, %v372_v8 }
 0x120   :  { %v445_v11 = vpop.f32.mrf.mxu1 }
 0x121   :  { %v446_v15 = vadd.f32 %v445_v11, %v374_v10 }
 0x15f   :  { %v514_v13 = vpop.f32.mrf.mxu0 }
 0x160   :  { %v585_v14 = vpop.f32.mrf.mxu1  ;;  %v515_v16 = vadd.f32 %v514_v13, %v444_v12 }
 0x161   :  { %v516_v17 = vpop.f32.mrf.mxu0 }
 0x162   :  { %v586_v18 = vadd.f32 %v585_v14, %v515_v16  ;;  %v517_v19 = vadd.f32 %v516_v17, %v446_v15  ;;  %v587_v20 = vpop.f32.mrf.mxu1 }
 0x164   :  { %v596_v21 = vmul.f32 %v586_v18, %v586_v18  ;;  %590 = vst [vmem:[#allocation7] sm:$0xff] %v586_v18  ;;  %594 = vst [vmem:[#allocation8] sm:$0xff] %v586_v18  ;;  %v588_v22 = vadd.f32 %v587_v20, %v517_v19 }
 0x166   :  { %600 = vst [vmem:[#allocation10] sm:$0xff] %v596_v21  ;;  %v597_v23 = vmul.f32 %v588_v22, %v588_v22  ;;  %591 = vst [vmem:[#allocation7 + $0x8] sm:$0xff] %v588_v22 }
 0x167   :  { %595 = vst [vmem:[#allocation8 + $0x8] sm:$0xff] %v588_v22 }
 0x168   :  { %703 = shalt.err (!%p700_p0)
}
 0x169   :  { %621 = dma.vmem_to_hbm [thread:$0]  %s619_s1, 256, %s810_s3, [#allocation9]   ;;  %601 = vst [vmem:[#allocation10 + $0x8] sm:$0xff] %v597_v23 }
 0x16a   :  { %s712_s8 = scalar_lea.vmem %s609_s28, 256  ;;  %p717_p2 = scmp.lt.s32.totalorder %s609_s28, %s609_s28 }
 0x16b   :  { %p713_p1 = scmp.ne.s32.totalorder %s609_s28, %s712_s8  ;;  %p718_p3 = scmp.lt.s32.totalorder %s712_s8, %s712_s8 }
 0x16d   :  { %p719_p4 = por %p718_p3, %p717_p2 }
 0x16f   :  { %p720_p5 = pnand %p719_p4, %p713_p1 }
 0x171   :  { %723 = shalt.err (!%p720_p5)
}
 0x172   :  { %611 = dma.vmem_to_hbm [thread:$0]  %s609_s28, 256, %s809_s2, [#allocation4]  }
 0x173   :  { %s732_s11 = scalar_lea.vmem %s629_s30, 256  ;;  %p737_p7 = scmp.lt.s32.totalorder %s629_s30, %s629_s30 }
 0x174   :  { %p733_p6 = scmp.ne.s32.totalorder %s629_s30, %s732_s11  ;;  %p738_p8 = scmp.lt.s32.totalorder %s732_s11, %s732_s11 }
 0x176   :  { %p739_p9 = por %p738_p8, %p737_p7 }
 0x178   :  { %p740_p10 = pnand %p739_p9, %p733_p6 }
 0x17a   :  { %743 = shalt.err (!%p740_p10)
}
 0x17b   :  { %631 = dma.vmem_to_hbm [thread:$0]  %s629_s30, 256, %s811_s4, [#allocation9]  }
 0x17c   :  { %756 = dma.done.wait [#allocation4], 256  }
 0x17d   :  { %757 = vsyncadd [#allocation4], 4294967040 }
 0x17e   :  { %758 = dma.done.wait [#allocation9], 512  }
 0x17f   :  { %759 = vsyncadd [#allocation9], 4294966784 }
 0x180   :  { %641 = vsyncpa [#allocation3], 1 }
 0x181   :  { %642 = vsyncpa [#allocation6], 1 }
 0x182   :  { %643 = vsyncpa [#allocation4], 1 }
 0x183   :  { %644 = vsyncpa [#allocation9], 1 }

</bundles_post_ra>
